<compile_context>
chip_gen: v7x
topology: tpu7x:2x2x1
jax: 0.10.0
libtpu: 0.0.40
codegen_flags: <defaults>
</compile_context>

<pallas_src>
import numpy as np

import jax
import jax.numpy as jnp
from jax.experimental import pallas as pl
from jax.experimental.pallas import tpu as pltpu


# ---------------------------------------------------------------------------
# Synthetic config (what DynamicQNetwork.__init__ would parse)
# ---------------------------------------------------------------------------
CONFIG = {
    "feature_order": [f"feat_{i}" for i in range(8)],          # input_dim = 8
    "architecture": {
        "profiles": {
            "balanced": {
                "hidden_layers": [32, 32],
                "activation": "relu",
                "dropout": 0.0,                                 # dropout off
            }
        }
    },
    "output_heads": {
        "q_values":      {"shape": [4], "activation": "linear"},
        "action_probs":  {"shape": [4], "activation": "softmax"},
        "state_value":   {"shape": [1], "activation": "tanh"},
        "feature_recon": {"shape_from": "input_dim", "activation": "sigmoid"},
    },
}

INPUT_DIM = len(CONFIG["feature_order"])
HIDDEN = CONFIG["architecture"]["profiles"]["balanced"]["hidden_layers"]
HEAD_NAMES = list(CONFIG["output_heads"].keys())                # fixed order
HEAD_DIMS = {
    "q_values": 4,
    "action_probs": 4,
    "state_value": 1,
    "feature_recon": INPUT_DIM,
}

# Packed-head column layout (lane-dense 128-wide output).
PACK = 128
_COL_OFFSETS = {}
_off = 0
for _name in HEAD_NAMES:
    _COL_OFFSETS[_name] = (_off, _off + HEAD_DIMS[_name])
    _off += HEAD_DIMS[_name]
TOTAL_HEAD_DIM = _off                                            # 17
assert TOTAL_HEAD_DIM <= PACK

Q_LO, Q_HI = _COL_OFFSETS["q_values"]          # [0, 4)
P_LO, P_HI = _COL_OFFSETS["action_probs"]      # [4, 8)
V_LO, V_HI = _COL_OFFSETS["state_value"]       # [8, 9)
R_LO, R_HI = _COL_OFFSETS["feature_recon"]     # [9, 17)

# Default max batch tile (rows per grid step). Sweep 2048-4096 (v7x) or
# 4096-8192 (v5e/v6e) for throughput; 2048 is a safe cross-generation default.
TB_MAX = 2048

NEG_BIG = -1e30   # additive "minus infinity" that stays finite in f32 math


def _round_up(n, m):
    return ((n + m - 1) // m) * m


# ---------------------------------------------------------------------------
# Precomputed lane constants (one (8,128) f32 array, VMEM-resident):
#   row 0: MASK_Q     : 1.0 on q_values lanes, 0 elsewhere
#   row 1: NEG_P      : 0.0 on action_probs lanes, -1e30 elsewhere (softmax mask)
#   row 2: PRE_SCALE  : 0.5 on recon lanes, 1.0 elsewhere (tanh argument scale)
#   row 3: OUT_SCALE  : 1.0 on value lane, 0.5 on recon lanes, 0 elsewhere
#   row 4: OUT_BIAS   : 0.5 on recon lanes, 0 elsewhere
# With these, sigmoid is computed inside the tanh pass:
#   sigmoid(z) = 0.5 * tanh(0.5 * z) + 0.5
# and the final packed output is a pure mul/add blend (padding lanes -> 0).
# ---------------------------------------------------------------------------
_LANE_CONSTS = np.zeros((8, PACK), np.float32)
_LANE_CONSTS[0, Q_LO:Q_HI] = 1.0
_LANE_CONSTS[1, :] = NEG_BIG
_LANE_CONSTS[1, P_LO:P_HI] = 0.0
_LANE_CONSTS[2, :] = 1.0
_LANE_CONSTS[2, R_LO:R_HI] = 0.5
_LANE_CONSTS[3, V_LO:V_HI] = 1.0
_LANE_CONSTS[3, R_LO:R_HI] = 0.5
_LANE_CONSTS[4, R_LO:R_HI] = 0.5


# ---------------------------------------------------------------------------
# Pallas kernel: backbone (Linear+ReLU x2) + fused packed heads
# ---------------------------------------------------------------------------
def _qnet_kernel(x_ref, w1_ref, b1_ref, w2_ref, b2_ref, wh_ref, bh_ref, c_ref,
                 out_ref):
    # backbone: Linear -> ReLU, Linear -> ReLU  (dropout = 0.0 -> identity)
    # bf16 operands on the MXU, f32 accumulate; elementwise math stays f32.
    x = x_ref[...]                                                    # (tb, 8) bf16
    h = jnp.dot(x, w1_ref[...], preferred_element_type=jnp.float32) + b1_ref[...]
    h = jnp.maximum(h, 0.0).astype(jnp.bfloat16)
    h = jnp.dot(h, w2_ref[...], preferred_element_type=jnp.float32) + b2_ref[...]
    h = jnp.maximum(h, 0.0).astype(jnp.bfloat16)

    # all four heads as one (32, 128) padded matmul -> (tb, 128) f32
    z = jnp.dot(h, wh_ref[...], preferred_element_type=jnp.float32) + bh_ref[...]

    mask_q   = c_ref[0:1, :]
    neg_p    = c_ref[1:2, :]
    pre_scl  = c_ref[2:3, :]
    out_scl  = c_ref[3:4, :]
    out_bias = c_ref[4:5, :]

    # --- action_probs: softmax restricted to the 4 prob lanes (additive mask);
    # non-prob lanes underflow to exactly 0 in e, so they drop out of the sum
    # and contribute 0 to the packed output. Exact divide (s is (tb,1)).
    zp = z + neg_p
    m = jnp.max(zp, axis=-1, keepdims=True)
    e = jnp.exp(zp - m)                                   # EUP pass #1
    s = jnp.sum(e, axis=-1, keepdims=True)
    probs = e / s

    # --- state_value (tanh) + feature_recon (sigmoid) in ONE tanh pass:
    #   value lanes:  tanh(z)
    #   recon lanes:  0.5 * tanh(0.5*z) + 0.5 == sigmoid(z)
    #   other lanes:  out_scl = out_bias = 0  -> contribute 0
    t = jnp.tanh(z * pre_scl)                             # EUP pass #2
    vr = t * out_scl + out_bias

    # --- assemble packed lane-dense output (disjoint lanes, padding -> 0) ---
    out = z * mask_q + probs + vr
    out_ref[...] = out.astype(out_ref.dtype)


# ---------------------------------------------------------------------------
# Parameter packing (done ONCE, outside the forward)
# ---------------------------------------------------------------------------
def pack_params(p):
    """p: PyTorch-style params (weights pre-transposed to (in, out), biases
    (1, out)). Returns the kernel-ready param dict (packed heads, bf16 weights,
    lane constants)."""
    wh = jnp.zeros((HIDDEN[1], PACK), jnp.float32)
    bh = jnp.zeros((1, PACK), jnp.float32)
    wh = (wh.at[:, Q_LO:Q_HI].set(p["wq"])
            .at[:, P_LO:P_HI].set(p["wp"])
            .at[:, V_LO:V_HI].set(p["wv"])
            .at[:, R_LO:R_HI].set(p["wr"]))
    bh = (bh.at[:, Q_LO:Q_HI].set(p["bq"])
            .at[:, P_LO:P_HI].set(p["bp"])
            .at[:, V_LO:V_HI].set(p["bv"])
            .at[:, R_LO:R_HI].set(p["br"]))
    return {
        "w1": p["w1"].astype(jnp.bfloat16),
        "b1": p["b1"].astype(jnp.float32),
        "w2": p["w2"].astype(jnp.bfloat16),
        "b2": p["b2"].astype(jnp.float32),
        "wh": wh.astype(jnp.bfloat16),
        "bh": bh,
        "lane_consts": jnp.asarray(_LANE_CONSTS),
    }


def _pick_tb(B, tb):
    if tb is not None:
        return tb
    if B <= 16:
        # single full-row block (exempt from the (8,128)/(16,128) tiling rule)
        return B
    # >= 2 grid steps so v7x megacore splits the batch across both TCs;
    # multiple-of-16 rows keeps bf16 sublane packing happy.
    half = _round_up(pl.cdiv(B, 2), 16)
    return min(TB_MAX, half)


# ---------------------------------------------------------------------------
# Wrapper: grid over the batch, params VMEM-resident, packed bf16 output
# ---------------------------------------------------------------------------
def dynamic_qnetwork_forward(x, packed_params, *, tb=None,
                             out_dtype=jnp.bfloat16, split_heads=True):
    """x: (B, INPUT_DIM) float. packed_params: output of pack_params().
    Returns a dict of head outputs (split_heads=True, matches the PyTorch
    module) or the raw packed (B, 128) array (split_heads=False, avoids the
    post-kernel re-slice HBM traffic when the consumer can slice lazily)."""
    B = x.shape[0]
    tb = _pick_tb(B, tb)
    grid = (pl.cdiv(B, tb),)
    pp = packed_params

    xb = x.astype(jnp.bfloat16)                       # halves the x DMA

    const = lambda i: (0, 0)     # params: same block every step -> resident
    in_specs = [
        pl.BlockSpec((tb, INPUT_DIM), lambda i: (i, 0)),
        pl.BlockSpec((INPUT_DIM, HIDDEN[0]), const),
        pl.BlockSpec((1, HIDDEN[0]), const),
        pl.BlockSpec((HIDDEN[0], HIDDEN[1]), const),
        pl.BlockSpec((1, HIDDEN[1]), const),
        pl.BlockSpec((HIDDEN[1], PACK), const),
        pl.BlockSpec((1, PACK), const),
        pl.BlockSpec((8, PACK), const),
    ]
    out_specs = pl.BlockSpec((tb, PACK), lambda i: (i, 0))

    # Per-step VMEM ~ tb * (few KiB): double-buffered x/out tiles plus the f32
    # (tb,128) temporaries. Keep well under v7x's 64 MiB/TC.
    vmem_limit = int(min(100 * 1024 * 1024, max(32 * 1024 * 1024, tb * 12 * 1024)))

    packed = pl.pallas_call(
        _qnet_kernel,
        grid=grid,
        in_specs=in_specs,
        out_specs=out_specs,
        out_shape=jax.ShapeDtypeStruct((B, PACK), out_dtype),
        compiler_params=pltpu.CompilerParams(
            dimension_semantics=("parallel",),       # megacore shard on v7x
            vmem_limit_bytes=vmem_limit,
        ),
    )(xb, pp["w1"], pp["b1"], pp["w2"], pp["b2"], pp["wh"], pp["bh"],
      pp["lane_consts"])

    if not split_heads:
        return packed

    # Static slices of the packed lane-dense output -> head dict (kept for
    # parity with the PyTorch module; prefer split_heads=False in hot paths).
    return {
        "q_values": packed[:, Q_LO:Q_HI],
        "action_probs": packed[:, P_LO:P_HI],
        "state_value": packed[:, V_LO:V_HI],
        "feature_recon": packed[:, R_LO:R_HI],
    }


# ---------------------------------------------------------------------------
# Deterministic parameter initialization (PyTorch nn.Linear shapes, transposed)
# ---------------------------------------------------------------------------
def init_params(key):
    def linear(key, fan_in, fan_out):
        kw, kb = jax.random.split(key)
        bound = 1.0 / jnp.sqrt(float(fan_in))
        # PyTorch stores weight as (out, in); we keep it pre-transposed (in, out).
        w = jax.random.uniform(kw, (fan_in, fan_out), jnp.float32, -bound, bound)
        b = jax.random.uniform(kb, (1, fan_out), jnp.float32, -bound, bound)
        return w, b

    keys = jax.random.split(key, 6)
    w1, b1 = linear(keys[0], INPUT_DIM, HIDDEN[0])
    w2, b2 = linear(keys[1], HIDDEN[0], HIDDEN[1])
    wq, bq = linear(keys[2], HIDDEN[1], HEAD_DIMS["q_values"])
    wp, bp = linear(keys[3], HIDDEN[1], HEAD_DIMS["action_probs"])
    wv, bv = linear(keys[4], HIDDEN[1], HEAD_DIMS["state_value"])
    wr, br = linear(keys[5], HIDDEN[1], HEAD_DIMS["feature_recon"])
    return {
        "w1": w1, "b1": b1, "w2": w2, "b2": b2,
        "wq": wq, "bq": bq, "wp": wp, "bp": bp,
        "wv": wv, "bv": bv, "wr": wr, "br": br,
    }


# ---------------------------------------------------------------------------
# Pure-JAX reference (f32) for a sanity check
# ---------------------------------------------------------------------------
def reference_forward(x, p):
    h = jnp.maximum(x @ p["w1"] + p["b1"], 0.0)
    h = jnp.maximum(h @ p["w2"] + p["b2"], 0.0)
    return {
        "q_values": h @ p["wq"] + p["bq"],
        "action_probs": jax.nn.softmax(h @ p["wp"] + p["bp"], axis=-1),
        "state_value": jnp.tanh(h @ p["wv"] + p["bv"]),
        "feature_recon": jax.nn.sigmoid(h @ p["wr"] + p["br"]),
    }


def _check(outputs, ref):
    # Tolerance covers bf16 MXU operands and the bf16 packed output store
    # (all head values are O(1), so bf16 rounding is ~4e-3 absolute).
    for name in HEAD_NAMES:
        got = outputs[name].astype(jnp.float32)
        assert got.shape == ref[name].shape, name
        assert jnp.allclose(got, ref[name], atol=3e-2, rtol=3e-2), name


if __name__ == "__main__":
    key = jax.random.PRNGKey(0)
    kx, kp, kx2 = jax.random.split(key, 3)
    params = init_params(kp)
    kernel_params = pack_params(params)          # heads packed ONCE, not per call
    jax.block_until_ready(kernel_params)

    # Small primary test: single grid step.
    B = 8
    x = jax.random.normal(kx, (B, INPUT_DIM), jnp.float32)
    outputs = dynamic_qnetwork_forward(x, kernel_params)
    jax.block_until_ready(outputs)
    _check(outputs, reference_forward(x, params))

    # Exercise the batch grid / pipelining with multiple tiles.
    B2 = 64
    x2 = jax.random.normal(kx2, (B2, INPUT_DIM), jnp.float32)
    outputs2 = dynamic_qnetwork_forward(x2, kernel_params, tb=16)   # grid=(4,)
    jax.block_until_ready(outputs2)
    _check(outputs2, reference_forward(x2, params))

    # Auto tile selection path (>=2 grid steps for megacore) + packed output.
    packed = dynamic_qnetwork_forward(x2, kernel_params, split_heads=False)
    jax.block_until_ready(packed)
    assert packed.shape == (B2, PACK) and packed.dtype == jnp.bfloat16

    print("KERNEL_OK")
</pallas_src>

<mosaic_0001>
module attributes {stable_mosaic.version = 11 : i64} {
  func.func @_qnet_kernel(%arg0: i32, %arg1: memref<8x8xbf16, #tpu.memory_space<vmem>>, %arg2: memref<8x32xbf16, #tpu.memory_space<vmem>>, %arg3: memref<1x32xf32, #tpu.memory_space<vmem>>, %arg4: memref<32x32xbf16, #tpu.memory_space<vmem>>, %arg5: memref<1x32xf32, #tpu.memory_space<vmem>>, %arg6: memref<32x128xbf16, #tpu.memory_space<vmem>>, %arg7: memref<1x128xf32, #tpu.memory_space<vmem>>, %arg8: memref<8x128xf32, #tpu.memory_space<vmem>>, %arg9: memref<8x128xbf16, #tpu.memory_space<vmem>>) attributes {dimension_semantics = [#tpu.dimension_semantics<parallel>], iteration_bounds = array<i64: 1>, scalar_prefetch = 0 : i64, scratch_operands = 0 : i64, tpu.core_type = #tpu.core_type<tc>, window_params = [{transform_indices = @transform_0, window_bounds = array<i64: 8, 8>}, {pipeline_mode = #tpu.pipeline_mode<synchronous>, transform_indices = @transform_1, window_bounds = array<i64: 8, 32>}, {pipeline_mode = #tpu.pipeline_mode<synchronous>, transform_indices = @transform_2, window_bounds = array<i64: 1, 32>}, {pipeline_mode = #tpu.pipeline_mode<synchronous>, transform_indices = @transform_3, window_bounds = array<i64: 32, 32>}, {pipeline_mode = #tpu.pipeline_mode<synchronous>, transform_indices = @transform_4, window_bounds = array<i64: 1, 32>}, {pipeline_mode = #tpu.pipeline_mode<synchronous>, transform_indices = @transform_5, window_bounds = array<i64: 32, 128>}, {pipeline_mode = #tpu.pipeline_mode<synchronous>, transform_indices = @transform_6, window_bounds = array<i64: 1, 128>}, {pipeline_mode = #tpu.pipeline_mode<synchronous>, transform_indices = @transform_7, window_bounds = array<i64: 8, 128>}, {transform_indices = @transform_8, window_bounds = array<i64: 8, 128>}]} {
    %c0 = arith.constant 0 : index
    %c0_0 = arith.constant 0 : index
    %0 = vector.load %arg1[%c0, %c0_0] : memref<8x8xbf16, #tpu.memory_space<vmem>>, vector<8x8xbf16>
    %c0_1 = arith.constant 0 : index
    %c0_2 = arith.constant 0 : index
    %1 = vector.load %arg2[%c0_1, %c0_2] : memref<8x32xbf16, #tpu.memory_space<vmem>>, vector<8x32xbf16>
    %cst = arith.constant dense<0.000000e+00> : vector<8x32xf32>
    %2 = tpu.matmul %0, %1, %cst {dimension_numbers = #tpu.dot_dimension_numbers<[1], [0], [0], [1], [0, 0, 1, 1], [], []>} : vector<8x8xbf16>, vector<8x32xbf16>, vector<8x32xf32> -> vector<8x32xf32>
    %c0_3 = arith.constant 0 : index
    %c0_4 = arith.constant 0 : index
    %3 = vector.load %arg3[%c0_3, %c0_4] : memref<1x32xf32, #tpu.memory_space<vmem>>, vector<1x32xf32>
    %4 = vector.broadcast %3 : vector<1x32xf32> to vector<8x32xf32>
    %5 = arith.addf %2, %4 : vector<8x32xf32>
    %cst_5 = arith.constant 0.000000e+00 : f32
    %6 = vector.broadcast %cst_5 : f32 to vector<8x32xf32>
    %7 = arith.maximumf %5, %6 : vector<8x32xf32>
    %8 = arith.truncf %7 : vector<8x32xf32> to vector<8x32xbf16>
    %c0_6 = arith.constant 0 : index
    %c0_7 = arith.constant 0 : index
    %9 = vector.load %arg4[%c0_6, %c0_7] : memref<32x32xbf16, #tpu.memory_space<vmem>>, vector<32x32xbf16>
    %cst_8 = arith.constant dense<0.000000e+00> : vector<8x32xf32>
    %10 = tpu.matmul %8, %9, %cst_8 {dimension_numbers = #tpu.dot_dimension_numbers<[1], [0], [0], [1], [0, 0, 1, 1], [], []>} : vector<8x32xbf16>, vector<32x32xbf16>, vector<8x32xf32> -> vector<8x32xf32>
    %c0_9 = arith.constant 0 : index
    %c0_10 = arith.constant 0 : index
    %11 = vector.load %arg5[%c0_9, %c0_10] : memref<1x32xf32, #tpu.memory_space<vmem>>, vector<1x32xf32>
    %12 = vector.broadcast %11 : vector<1x32xf32> to vector<8x32xf32>
    %13 = arith.addf %10, %12 : vector<8x32xf32>
    %cst_11 = arith.constant 0.000000e+00 : f32
    %14 = vector.broadcast %cst_11 : f32 to vector<8x32xf32>
    %15 = arith.maximumf %13, %14 : vector<8x32xf32>
    %16 = arith.truncf %15 : vector<8x32xf32> to vector<8x32xbf16>
    %c0_12 = arith.constant 0 : index
    %c0_13 = arith.constant 0 : index
    %17 = vector.load %arg6[%c0_12, %c0_13] : memref<32x128xbf16, #tpu.memory_space<vmem>>, vector<32x128xbf16>
    %cst_14 = arith.constant dense<0.000000e+00> : vector<8x128xf32>
    %18 = tpu.matmul %16, %17, %cst_14 {dimension_numbers = #tpu.dot_dimension_numbers<[1], [0], [0], [1], [0, 0, 1, 1], [], []>} : vector<8x32xbf16>, vector<32x128xbf16>, vector<8x128xf32> -> vector<8x128xf32>
    %c0_15 = arith.constant 0 : index
    %c0_16 = arith.constant 0 : index
    %19 = vector.load %arg7[%c0_15, %c0_16] : memref<1x128xf32, #tpu.memory_space<vmem>>, vector<1x128xf32>
    %20 = vector.broadcast %19 : vector<1x128xf32> to vector<8x128xf32>
    %21 = arith.addf %18, %20 : vector<8x128xf32>
    %c0_17 = arith.constant 0 : index
    %c0_18 = arith.constant 0 : index
    %22 = vector.load %arg8[%c0_17, %c0_18] : memref<8x128xf32, #tpu.memory_space<vmem>>, vector<1x128xf32>
    %c1 = arith.constant 1 : index
    %c0_19 = arith.constant 0 : index
    %23 = vector.load %arg8[%c1, %c0_19] : memref<8x128xf32, #tpu.memory_space<vmem>>, vector<1x128xf32>
    %c2 = arith.constant 2 : index
    %c0_20 = arith.constant 0 : index
    %24 = vector.load %arg8[%c2, %c0_20] : memref<8x128xf32, #tpu.memory_space<vmem>>, vector<1x128xf32>
    %c3 = arith.constant 3 : index
    %c0_21 = arith.constant 0 : index
    %25 = vector.load %arg8[%c3, %c0_21] : memref<8x128xf32, #tpu.memory_space<vmem>>, vector<1x128xf32>
    %c4 = arith.constant 4 : index
    %c0_22 = arith.constant 0 : index
    %26 = vector.load %arg8[%c4, %c0_22] : memref<8x128xf32, #tpu.memory_space<vmem>>, vector<1x128xf32>
    %27 = vector.broadcast %23 : vector<1x128xf32> to vector<8x128xf32>
    %28 = arith.addf %21, %27 : vector<8x128xf32>
    %cst_23 = arith.constant dense<0xFF800000> : vector<8xf32>
    %29 = vector.multi_reduction <maximumf>, %28, %cst_23 [1] : vector<8x128xf32> to vector<8xf32>
    %30 = vector.shape_cast %29 : vector<8xf32> to vector<8x1xf32>
    %31 = vector.broadcast %30 : vector<8x1xf32> to vector<8x128xf32>
    %32 = arith.subf %28, %31 : vector<8x128xf32>
    %33 = math.exp %32 : vector<8x128xf32>
    %cst_24 = arith.constant dense<0.000000e+00> : vector<8xf32>
    %34 = vector.multi_reduction <add>, %33, %cst_24 [1] : vector<8x128xf32> to vector<8xf32>
    %35 = vector.shape_cast %34 : vector<8xf32> to vector<8x1xf32>
    %36 = vector.broadcast %35 : vector<8x1xf32> to vector<8x128xf32>
    %37 = arith.divf %33, %36 : vector<8x128xf32>
    %38 = vector.broadcast %24 : vector<1x128xf32> to vector<8x128xf32>
    %39 = arith.mulf %21, %38 : vector<8x128xf32>
    %40 = math.tanh %39 : vector<8x128xf32>
    %41 = vector.broadcast %25 : vector<1x128xf32> to vector<8x128xf32>
    %42 = arith.mulf %40, %41 : vector<8x128xf32>
    %43 = vector.broadcast %26 : vector<1x128xf32> to vector<8x128xf32>
    %44 = arith.addf %42, %43 : vector<8x128xf32>
    %45 = vector.broadcast %22 : vector<1x128xf32> to vector<8x128xf32>
    %46 = arith.mulf %21, %45 : vector<8x128xf32>
    %47 = arith.addf %46, %37 : vector<8x128xf32>
    %48 = arith.addf %47, %44 : vector<8x128xf32>
    %49 = arith.truncf %48 : vector<8x128xf32> to vector<8x128xbf16>
    %c0_25 = arith.constant 0 : index
    %c0_26 = arith.constant 0 : index
    %50 = vector.load %arg9[%c0_25, %c0_26] : memref<8x128xbf16, #tpu.memory_space<vmem>>, vector<8x128xbf16>
    tpu.vector_store %arg9[%c0_25, %c0_26], %49 {strides = array<i32>} : memref<8x128xbf16, #tpu.memory_space<vmem>>, vector<8x128xbf16>,
    return
  }
  func.func @transform_0(%arg0: i32) -> (i32, i32) {
    %c0_i32 = arith.constant 0 : i32
    %c0_i32_0 = arith.constant 0 : i32
    return %arg0, %c0_i32 : i32, i32
  }
  func.func @transform_1(%arg0: i32) -> (i32, i32) {
    %c0_i32 = arith.constant 0 : i32
    %c0_i32_0 = arith.constant 0 : i32
    %c0_i32_1 = arith.constant 0 : i32
    return %c0_i32, %c0_i32_0 : i32, i32
  }
  func.func @transform_2(%arg0: i32) -> (i32, i32) {
    %c0_i32 = arith.constant 0 : i32
    %c0_i32_0 = arith.constant 0 : i32
    %c0_i32_1 = arith.constant 0 : i32
    return %c0_i32, %c0_i32_0 : i32, i32
  }
  func.func @transform_3(%arg0: i32) -> (i32, i32) {
    %c0_i32 = arith.constant 0 : i32
    %c0_i32_0 = arith.constant 0 : i32
    %c0_i32_1 = arith.constant 0 : i32
    return %c0_i32, %c0_i32_0 : i32, i32
  }
  func.func @transform_4(%arg0: i32) -> (i32, i32) {
    %c0_i32 = arith.constant 0 : i32
    %c0_i32_0 = arith.constant 0 : i32
    %c0_i32_1 = arith.constant 0 : i32
    return %c0_i32, %c0_i32_0 : i32, i32
  }
  func.func @transform_5(%arg0: i32) -> (i32, i32) {
    %c0_i32 = arith.constant 0 : i32
    %c0_i32_0 = arith.constant 0 : i32
    %c0_i32_1 = arith.constant 0 : i32
    return %c0_i32, %c0_i32_0 : i32, i32
  }
  func.func @transform_6(%arg0: i32) -> (i32, i32) {
    %c0_i32 = arith.constant 0 : i32
    %c0_i32_0 = arith.constant 0 : i32
    %c0_i32_1 = arith.constant 0 : i32
    return %c0_i32, %c0_i32_0 : i32, i32
  }
  func.func @transform_7(%arg0: i32) -> (i32, i32) {
    %c0_i32 = arith.constant 0 : i32
    %c0_i32_0 = arith.constant 0 : i32
    %c0_i32_1 = arith.constant 0 : i32
    return %c0_i32, %c0_i32_0 : i32, i32
  }
  func.func @transform_8(%arg0: i32) -> (i32, i32) {
    %c0_i32 = arith.constant 0 : i32
    %c0_i32_0 = arith.constant 0 : i32
    return %arg0, %c0_i32 : i32, i32
  }
}

</mosaic_0001>

<bundles_post_ra>
// kernel: tpu_custom_call.1
= control target key start
LH: loop header
LB: loop body
LE: loop exit
PB: predicated region body
PF: predicated region fallthrough
CT: control target
= control target key end

     0   :  { %13 = vsyncpa [#allocation3], 0  ;;  %s658_s0 = inlined_call_operand.hbm [shape: bf16[8,8], index: 0, kind: input, shape index: {}]   ;;  %s659_s1 = inlined_call_operand.hbm [shape: bf16[8,32], index: 1, kind: input, shape index: {}]   ;;  %s660_s2 = inlined_call_operand.vmem [shape: f32[1,32], index: 2, kind: input, shape index: {}]   ;;  %s661_s3 = inlined_call_operand.hbm [shape: bf16[32,32], index: 3, kind: input, shape index: {}]   ;;  %s662_s4 = inlined_call_operand.vmem [shape: f32[1,32], index: 4, kind: input, shape index: {}]   ;;  %s663_s5 = inlined_call_operand.vmem [shape: bf16[32,128], index: 5, kind: input, shape index: {}]   ;;  %s664_s6 = inlined_call_operand.hbm [shape: f32[1,128], index: 6, kind: input, shape index: {}]   ;;  %s665_s7 = inlined_call_operand.vmem [shape: f32[8,128], index: 7, kind: input, shape index: {}]   ;;  %s666_s8 = inlined_call_operand.hbm [shape: bf16[8,128], index: 8, kind: output, shape index: {}]  }
   0x1   :  { %14 = vsyncpa [#allocation6], 0 }
   0x2   :  { %15 = vsyncpa [#allocation9], 0 }
   0x3   :  { %16 = vsyncpa [#allocation4], 0  ;;  %s517_s27 = smov [#allocation5]   ;;  %s518_s29 = smov [#allocation2]  }
   0x4   :  { %s33_s28 = sshll.u32 %s517_s27, 4  ;;  %s23_s30 = sshll.u32 %s518_s29, 4  ;;  %s34_s28 = int_to_ptr.vmem [resolvable:$true] %s33_s28  ;;  %s24_s30 = int_to_ptr.vmem [resolvable:$true] %s23_s30 }
   0x5   :  { %s399_s11 = scalar_lea.hbm %s659_s1, 64 }
   0x6   :  { %p400_p0 = scmp.ne.s32.totalorder %s659_s1, %s399_s11  ;;  %p403_p1 = scmp.lt.u32.totalorder %s399_s11, %s659_s1 }
   0x8   :  { %p405_p2 = pnand %p403_p1, %p400_p0 }
   0xa   :  { %408 = shalt.err (!%p405_p2)
}
   0xb   :  { %s409_s16 = scalar_lea.vmem %s34_s28, 64  ;;  %p414_p4 = scmp.lt.s32.totalorder %s34_s28, %s34_s28 }
   0xc   :  { %p410_p3 = scmp.ne.s32.totalorder %s34_s28, %s409_s16  ;;  %p415_p5 = scmp.lt.s32.totalorder %s409_s16, %s409_s16 }
   0xe   :  { %p416_p6 = por %p415_p5, %p414_p4 }
  0x10   :  { %p417_p7 = pnand %p416_p6, %p410_p3 }
  0x12   :  { %420 = shalt.err (!%p417_p7)
}
  0x13   :  { %36 = dma.hbm_to_vmem [thread:$0]  %s659_s1, 64, %s34_s28, [#allocation6]  }
  0x14   :  { %s421_s21 = scalar_lea.hbm %s658_s0, 64 }
  0x15   :  { %p422_p8 = scmp.ne.s32.totalorder %s658_s0, %s421_s21  ;;  %p425_p9 = scmp.lt.u32.totalorder %s421_s21, %s658_s0 }
  0x17   :  { %p427_p10 = pnand %p425_p9, %p422_p8 }
  0x19   :  { %430 = shalt.err (!%p427_p10)
}
  0x1a   :  { %s431_s26 = scalar_lea.vmem %s24_s30, 64  ;;  %p436_p12 = scmp.lt.s32.totalorder %s24_s30, %s24_s30 }
  0x1b   :  { %p432_p11 = scmp.ne.s32.totalorder %s24_s30, %s431_s26  ;;  %p437_p13 = scmp.lt.s32.totalorder %s431_s26, %s431_s26 }
  0x1d   :  { %p438_p0 = por %p437_p13, %p436_p12 }
  0x1f   :  { %p439_p1 = pnand %p438_p0, %p432_p11 }
  0x21   :  { %442 = shalt.err (!%p439_p1)
}
  0x22   :  { %26 = dma.hbm_to_vmem [thread:$0]  %s658_s0, 64, %s24_s30, [#allocation3]  }
  0x23   :  { %s519_s28 = smov [#allocation7]   ;;  %s443_s11 = scalar_lea.hbm %s661_s3, 256 }
  0x24   :  { %s44_s29 = sshll.u32 %s519_s28, 4  ;;  %p444_p2 = scmp.ne.s32.totalorder %s661_s3, %s443_s11  ;;  %s45_s29 = int_to_ptr.vmem [resolvable:$true] %s44_s29 }
  0x25   :  { %p447_p3 = scmp.lt.u32.totalorder %s443_s11, %s661_s3 }
  0x27   :  { %p449_p4 = pnand %p447_p3, %p444_p2 }
  0x29   :  { %452 = shalt.err (!%p449_p4)
}
  0x2a   :  { %s453_s16 = scalar_lea.vmem %s45_s29, 256  ;;  %p458_p6 = scmp.lt.s32.totalorder %s45_s29, %s45_s29 }
  0x2b   :  { %p454_p5 = scmp.ne.s32.totalorder %s45_s29, %s453_s16  ;;  %p459_p7 = scmp.lt.s32.totalorder %s453_s16, %s453_s16 }
  0x2d   :  { %p460_p8 = por %p459_p7, %p458_p6 }
  0x2f   :  { %p461_p9 = pnand %p460_p8, %p454_p5 }
  0x31   :  { %464 = shalt.err (!%p461_p9)
}
  0x32   :  { %s520_s0 = smov 64   ;;  %s521_s30 = smov 4  }
  0x33   :  { %50 = dma.hbm_to_vmem [thread:$0]  %s661_s3, 256, %s45_s29, [#allocation6], %s520_s0, %s520_s0, %s521_s30  }
  0x34   :  { %s522_s19 = smov [#allocation8]   ;;  %s465_s23 = scalar_lea.hbm %s664_s6, 16 }
  0x35   :  { %s61_s20 = sshll.u32 %s522_s19, 4  ;;  %p466_p10 = scmp.ne.s32.totalorder %s664_s6, %s465_s23  ;;  %s62_s20 = int_to_ptr.vmem [resolvable:$true] %s61_s20 }
  0x36   :  { %p469_p11 = scmp.lt.u32.totalorder %s465_s23, %s664_s6 }
  0x38   :  { %p471_p12 = pnand %p469_p11, %p466_p10 }
  0x3a   :  { %474 = shalt.err (!%p471_p12)
}
  0x3b   :  { %s475_s27 = scalar_lea.vmem %s62_s20, 16  ;;  %s479_s3 = scalar_lea.vmem %s62_s20, 32 }
  0x3c   :  { %p476_p13 = scmp.ne.s32.totalorder %s62_s20, %s475_s27  ;;  %p480_p0 = scmp.lt.s32.totalorder %s62_s20, %s62_s20 }
  0x3d   :  { %p481_p1 = scmp.lt.s32.totalorder %s479_s3, %s475_s27 }
  0x3f   :  { %p482_p2 = por %p481_p1, %p480_p0 }
  0x41   :  { %p483_p3 = pnand %p482_p2, %p476_p13 }
  0x43   :  { %486 = shalt.err (!%p483_p3)
}
  0x44   :  { %64 = dma.hbm_to_vmem [thread:$0]  %s664_s6, 16, %s62_s20, [#allocation9]  }
  0x45   :  { %509 = dma.done.wait [#allocation3], 64  }
  0x46   :  { %510 = vsyncadd [#allocation3], 4294967232 }
  0x47   :  { %511 = dma.done.wait [#allocation6], 320  }
  0x48   :  { %512 = vsyncadd [#allocation6], 4294966976 }
  0x49   :  { %513 = dma.done.wait [#allocation9], 16  }
  0x4a   :  { %514 = vsyncadd [#allocation9], 4294967280  ;;  %v523_v0 = vmov 0.0   ;;  %vm524_vm0 = vmmov 0   ;;  %vm93_vm1 = vcmask 1043456   ;;  %vm89_vm2 = vcmask 64512  }
  0x4b   :  { %358 = vmatprep.subr.bf16.mxu0 %v523_v0  ;;  %360 = vmatprep.mubr.msk.bf16.mxu0 %vm524_vm0, %v523_v0  ;;  %v81_v1 = vld [vmem:[#allocation5] sm:$0xf]  ;;  %v80_v2 = vld [vmem:[#allocation2] sm:$0xf]  ;;  %v389_v4 = vld [vmem:[#allocation7] sm:$0xff]   ;;  %vm162_vm3 = vcmask 261120  }
  0x4c   :  { %364 = vmatprep.subr.bf16.mxu1 %v523_v0  ;;  %368 = vmatprep.mubr.msk.bf16.mxu1 %vm524_vm0, %v523_v0  ;;  %v95_v3 = vsel %vm93_vm1, %v81_v1, 0  ;;  %v390_v5 = vld [vmem:[#allocation7 + $0x8] sm:$0xff]   ;;  %v391_v6 = vld [vmem:[%s663_s5] sm:$0xff]   ;;  %v341_v24 = vld [vmem:[#allocation8] ss:$0 sm:$0xff]  ;;  %s525_s21 = smov [#allocation10]  }
  0x4d   :  { %359 = vmatpush3.bf16.msra.mxu0 %v95_v3  ;;  %365 = vmatpush3.bf16.msra.mxu1 %v389_v4  ;;  %v335_v7 = vld [vmem:[%s660_s2] ss:$0 sm:$0xff]  ;;  %v392_v15 = vld [vmem:[%s663_s5 + $0x8] sm:$0xff]   ;;  %v345_v26 = vld [vmem:[%s665_s7 + $0x1] ss:$0 sm:$0xff]  ;;  %s324_s22 = sshll.u32 %s525_s21, 4  ;;  %s325_s22 = int_to_ptr.vmem [resolvable:$true] %s324_s22 }
  0x4e   :  { %372 = vmatprep.subr.bf16.mxu0 %v523_v0  ;;  %366 = vmatprep.subr.bf16.mxu1 %v523_v0  ;;  %v337_v16 = vld [vmem:[%s662_s4] ss:$0 sm:$0xff]  ;;  %v346_v36 = vld [vmem:[%s665_s7 + $0x2] ss:$0 sm:$0xff]  ;;  %v347_v40 = vld [vmem:[%s665_s7 + $0x3] ss:$0 sm:$0xff]  ;;  %p492_p5 = scmp.lt.s32.totalorder %s325_s22, %s325_s22 }
  0x4f   :  { %v349_v41 = vld [vmem:[%s665_s7] ss:$0 sm:$0xff]  ;;  %v348_v44 = vld [vmem:[%s665_s7 + $0x4] ss:$0 sm:$0xff]  ;;  %s487_s23 = scalar_lea.vmem %s325_s22, 64 }
  0x50   :  { %361 = vmatmul.mubr.msk.bf16.vlgmr.msra.gmra.mrb[0].mxu0 %vm89_vm2, %v80_v2  ;;  %p488_p4 = scmp.ne.s32.totalorder %s325_s22, %s487_s23  ;;  %p493_p6 = scmp.lt.s32.totalorder %s487_s23, %s487_s23 }
  0x51   :  { %376 = vmatprep.mubr.msk.bf16.mxu0 %vm524_vm0, %v523_v0  ;;  %367 = vmatpush3.bf16.msra.mxu1 %v390_v5 }
  0x52   :  { %373 = vmatpush3.bf16.msra.mxu0 %v391_v6  ;;  %p494_p7 = por %p493_p6, %p492_p5 }
  0x53   :  { %374 = vmatprep.subr.bf16.mxu0 %v523_v0 }
  0x54   :  { %p495_p8 = pnand %p494_p7, %p488_p4 }
  0x56   :  { %375 = vmatpush3.bf16.msra.mxu0 %v392_v15 }
 0x123   :  { %v131_v8 = vpop.f32.mrb[0].mxu0 }
 0x124   :  { %v132_v9 = vadd.f32 %v335_v7, %v131_v8  ;;  %v362_v10 = vpop.f32.mrb[1].mxu0 }
 0x125   :  { %v134_v11 = vpop.f32.mrb[2].mxu0 }
 0x126   :  { %v137_v12 = vmax.f32 %v132_v9, 0.0  ;;  %v363_v13 = vpop.f32.mrb[3].mxu0 }
 0x128   :  { %v138_v14 = vpack.c.bf16 %v137_v12, %v137_v12 }
 0x12a   :  { %369 = vmatmul.mubr.msk.bf16.vlgmr.msra.gmra.mrb[0].mxu1 %vm162_vm3, %v138_v14 }
 0x1fd   :  { %v200_v17 = vpop.f32.mrb[0].mxu1 }
 0x1fe   :  { %v201_v18 = vadd.f32 %v337_v16, %v200_v17  ;;  %v370_v19 = vpop.f32.mrb[1].mxu1 }
 0x1ff   :  { %v203_v20 = vpop.f32.mrb[2].mxu1 }
 0x200   :  { %v206_v21 = vmax.f32 %v201_v18, 0.0  ;;  %v371_v22 = vpop.f32.mrb[3].mxu1 }
 0x202   :  { %v207_v23 = vpack.c.bf16 %v206_v21, %v206_v21 }
 0x204   :  { %377 = vmatmul.mubr.msk.bf16.vlgmr.msra.gmra.mrb[4].mxu0 %vm162_vm3, %v207_v23 }
 0x2d7   :  { %v268_v25 = vpop.f32.mrb[4].mxu0 }
 0x2d8   :  { %v269_v27 = vadd.f32 %v341_v24, %v268_v25  ;;  %v378_v28 = vpop.f32.mrb[5].mxu0 }
 0x2d9   :  { %v271_v29 = vpop.f32.mrb[6].mxu0 }
 0x2da   :  { %v379_v30 = vpop.f32.mrb[7].mxu0  ;;  %v283_v31 = vadd.f32 %v345_v26, %v269_v27  ;;  %v297_v37 = vmul.f32 %v346_v36, %v269_v27  ;;  %v313_v45 = vmul.f32 %v349_v41, %v269_v27 }
 0x2dc   :  { %284 = vmax.xlane.f32.xlu0 %v283_v31 }
 0x369   :  { %v285_v32 = vpop.xlane.xlu0 %284 }
 0x36a   :  { %v286_v33 = vsub.f32 %v283_v31, %v285_v32 }
 0x36c   :  { %v287_v34 = vmul.f32 1.442695, %v286_v33 }
 0x36e   :  { %393 = vpow2.f32 %v287_v34 }
 0x36f   :  { %395 = vtanh.f32 %v297_v37 }
 0x378   :  { %v394_v35 = vpop.eup %393 }
 0x379   :  { %289 = vadd.xlane.f32.xlu0 %v394_v35  ;;  %v396_v39 = vpop.eup %395 }
 0x37a   :  { %v303_v42 = vmul.f32 %v396_v39, %v347_v40 }
 0x37c   :  { %v308_v47 = vadd.f32 %v348_v44, %v303_v42 }
 0x406   :  { %v290_v38 = vpop.xlane.xlu0 %289 }
 0x407   :  { %397 = vrcp.f32 %v290_v38 }
 0x411   :  { %v398_v43 = vpop.eup %397 }
 0x412   :  { %v292_v46 = vmul.f32 %v398_v43, %v394_v35 }
 0x414   :  { %v314_v48 = vadd.f32 %v313_v45, %v292_v46 }
 0x416   :  { %v315_v49 = vadd.f32 %v314_v48, %v308_v47 }
 0x418   :  { %v316_v50 = vpack.c.bf16 %v315_v49, %v315_v49 }
 0x41a   :  { %317 = vst [vmem:[#allocation10] sm:$0xf] %v316_v50 }
 0x41b   :  { %498 = shalt.err (!%p495_p8)
}
 0x41c   :  { %s499_s7 = scalar_lea.hbm %s666_s8, 64 }
 0x41d   :  { %p500_p9 = scmp.ne.s32.totalorder %s666_s8, %s499_s7  ;;  %p503_p10 = scmp.lt.u32.totalorder %s499_s7, %s666_s8 }
 0x41f   :  { %p505_p11 = pnand %p503_p10, %p500_p9 }
 0x421   :  { %508 = shalt.err (!%p505_p11)
}
 0x422   :  { %327 = dma.vmem_to_hbm [thread:$0]  %s325_s22, 64, %s666_s8, [#allocation4]  }
 0x423   :  { %515 = dma.done.wait [#allocation4], 64  }
 0x424   :  { %516 = vsyncadd [#allocation4], 4294967232 }
 0x425   :  { %331 = vsyncpa [#allocation3], 1 }
 0x426   :  { %332 = vsyncpa [#allocation6], 1 }
 0x427   :  { %333 = vsyncpa [#allocation9], 1 }
 0x428   :  { %334 = vsyncpa [#allocation4], 1 }

</bundles_post_ra>
